<compile_context>
chip_gen: v5e
topology: v5e:2x2
jax: 0.10.0
libtpu: 0.0.40
codegen_flags: <defaults>
</compile_context>

<pallas_src>
import jax
import jax.numpy as jnp
from jax.experimental import pallas as pl
from jax.experimental.pallas import tpu as pltpu


def _base_kernel(item_ref, scat_lhs_ref, titem_ref, trating_ref, state_ref,
                 new_state_ref, tr_ref, loss_ref,
                 g_acc, ratio_acc, nz_acc):
    """One grid step handles one I_t-wide tile of the item axis."""
    i = pl.program_id(0)
    n_tiles = pl.num_programs(0)
    I_t = state_ref.shape[1]          # items in this tile
    N = item_ref.shape[0]             # observed interactions
    M = titem_ref.shape[1]            # targets

    @pl.when(i == 0)
    def _():
        g_acc[...] = jnp.zeros_like(g_acc)
        ratio_acc[...] = jnp.zeros_like(ratio_acc)
        nz_acc[...] = jnp.zeros_like(nz_acc)

    tile_start = i * I_t

    # ---- fused scatter_add (base & count) via one-hot matmul ---------------
    local_item = item_ref[...] - tile_start                               # (N, 1)
    scat = (jax.lax.broadcasted_iota(jnp.int32, (N, I_t), 1) == local_item)
    scat = scat.astype(jnp.float32)                                        # (N, I_t)

    # rows: 0 -> rating (base delta), 1 -> ones (count delta)
    delta = jnp.dot(scat_lhs_ref[...], scat,
                    preferred_element_type=jnp.float32)                    # (2, I_t)
    new_state = state_ref[...] + delta
    new_state_ref[...] = new_state

    # ---- fused gather (base & count at target items) via one-hot matmul ----
    local_t = titem_ref[...] - tile_start                                  # (1, M)
    gath = (jax.lax.broadcasted_iota(jnp.int32, (I_t, M), 0) == local_t)
    gath = gath.astype(jnp.float32)                                        # (I_t, M)
    g_acc[...] += jnp.dot(new_state, gath,
                          preferred_element_type=jnp.float32)              # (2, M)

    # ---- cold-start fallback partial sums over this tile's items -----------
    nb = new_state[0:1, :]
    nc = new_state[1:2, :]
    nz = nc != 0.0
    ratio = jnp.where(nz, nb / jnp.where(nz, nc, 1.0), 0.0)
    ratio_acc[...] += jnp.sum(ratio, keepdims=True)
    nz_acc[...] += jnp.sum(nz.astype(jnp.float32), keepdims=True)

    # ---- finalize on the last tile ------------------------------------------
    @pl.when(i == n_tiles - 1)
    def _():
        g_base = g_acc[0:1, :]                                             # (1, M)
        g_count = g_acc[1:2, :]                                            # (1, M)
        tr = g_base / (g_count + 1e-10)
        fallback = ratio_acc[...] / jnp.maximum(nz_acc[...], 1.0)          # (1, 1)
        tr = jnp.where(g_count == 0.0, fallback, tr)
        tr_ref[...] = tr
        diff = tr - trating_ref[...]
        loss_ref[...] = jnp.mean(diff * diff, keepdims=True)               # (1, 1)


def base_forward(item, rating, target_item, target_rating, base, count,
                 item_tile=512):
    """Training-mode forward pass of `Base` (user / explicit / MSE)."""
    N = item.shape[0]
    M = target_item.shape[0]
    I = base.shape[0]

    # Item-axis tile: multiple of 128 lanes.  (On v7x keep N*I_t*4 + I_t*M*4
    # well under ~24 MiB; larger tiles are fine on v5e/v6e with the bigger
    # VMEM — at these demo sizes anything works.)
    I_t = item_tile if I >= item_tile else 128
    I_pad = ((I + I_t - 1) // I_t) * I_t
    n_tiles = I_pad // I_t

    # Stacked state slab: row 0 = base, row 1 = count (padded items are zero,
    # so they contribute nothing to the fallback mean).
    state = jnp.zeros((2, I_pad), jnp.float32)
    state = state.at[0, :I].set(base.astype(jnp.float32))
    state = state.at[1, :I].set(count.astype(jnp.float32))

    # Fused scatter LHS: row 0 = rating, row 1 = ones  -> one MXU pass per tile.
    scat_lhs = jnp.stack(
        [rating.astype(jnp.float32), jnp.ones((N,), jnp.float32)], axis=0)  # (2, N)

    item2 = item.reshape(N, 1).astype(jnp.int32)
    titem2 = target_item.reshape(1, M).astype(jnp.int32)
    trating2 = target_rating.reshape(1, M).astype(jnp.float32)

    cost = pl.CostEstimate(
        flops=2 * (2 * N * I_pad + 2 * I_pad * M) + 8 * I_pad,
        transcendentals=0,
        bytes_accessed=4 * (N + 2 * N + 2 * M + 4 * 2 * I_pad + M + 1),
    )

    new_state, tr, loss = pl.pallas_call(
        _base_kernel,
        out_shape=(
            jax.ShapeDtypeStruct((2, I_pad), jnp.float32),   # new [base; count]
            jax.ShapeDtypeStruct((1, M), jnp.float32),       # target_rating
            jax.ShapeDtypeStruct((1, 1), jnp.float32),       # loss
        ),
        grid_spec=pltpu.PrefetchScalarGridSpec(
            num_scalar_prefetch=0,
            grid=(n_tiles,),
            in_specs=[
                pl.BlockSpec((N, 1), lambda i: (0, 0)),      # item indices
                pl.BlockSpec((2, N), lambda i: (0, 0)),      # [rating; ones]
                pl.BlockSpec((1, M), lambda i: (0, 0)),      # target items
                pl.BlockSpec((1, M), lambda i: (0, 0)),      # target ratings
                pl.BlockSpec((2, I_t), lambda i: (0, i)),    # state tile
            ],
            out_specs=[
                pl.BlockSpec((2, I_t), lambda i: (0, i)),    # new state tile
                pl.BlockSpec((1, M), lambda i: (0, 0)),      # target_rating
                pl.BlockSpec((1, 1), lambda i: (0, 0)),      # loss
            ],
            scratch_shapes=[
                pltpu.VMEM((2, M), jnp.float32),             # gathered base/count acc
                pltpu.VMEM((1, 1), jnp.float32),             # sum(base/count | count!=0)
                pltpu.VMEM((1, 1), jnp.float32),             # sum(count!=0)
            ],
        ),
        input_output_aliases={4: 0},                         # state -> new state
        compiler_params=pltpu.CompilerParams(
            dimension_semantics=("arbitrary",)),
        cost_estimate=cost,
    )(item2, scat_lhs, titem2, trating2, state)

    return {
        "base": new_state[0, :I],
        "count": new_state[1, :I],
        "target_rating": tr.reshape(M),
        "loss": loss.reshape(()),
    }


def _reference(item, rating, target_item, target_rating, base, count):
    """Plain-JAX reference mirroring the PyTorch forward."""
    new_base = base.at[item].add(rating)
    new_count = count.at[item].add(jnp.ones_like(rating))
    tr = new_base[target_item] / (new_count[target_item] + 1e-10)
    nz = new_count != 0
    safe = jnp.where(nz, new_count, 1.0)
    fallback = jnp.sum(jnp.where(nz, new_base / safe, 0.0)) / jnp.maximum(
        jnp.sum(nz.astype(jnp.float32)), 1.0)
    tr = jnp.where(new_count[target_item] == 0, fallback, tr)
    loss = jnp.mean((tr - target_rating) ** 2)
    return new_base, new_count, tr, loss


if __name__ == "__main__":
    num_users = 8
    num_items = 300   # not a multiple of 128 -> exercises padding + 3-tile grid
    N = 16            # observed (item, rating) pairs
    M = 16            # target pairs

    key = jax.random.PRNGKey(0)
    k1, k2, k3, k4 = jax.random.split(key, 4)

    item = jax.random.randint(k1, (N,), 0, num_items, dtype=jnp.int32)
    rating = jax.random.uniform(k2, (N,), jnp.float32, 1.0, 5.0)
    target_item = jax.random.randint(k3, (M,), 0, num_items, dtype=jnp.int32)
    target_rating = jax.random.uniform(k4, (M,), jnp.float32, 1.0, 5.0)

    # registered buffers, zero-initialized as in __init__
    base = jnp.zeros((num_items,), jnp.float32)
    count = jnp.zeros((num_items,), jnp.float32)

    fwd = jax.jit(base_forward)
    out = fwd(item, rating, target_item, target_rating, base, count)
    jax.block_until_ready(out)

    ref_base, ref_count, ref_tr, ref_loss = _reference(
        item, rating, target_item, target_rating, base, count)

    assert jnp.allclose(out["base"], ref_base, atol=1e-5)
    assert jnp.allclose(out["count"], ref_count, atol=1e-5)
    assert jnp.allclose(out["target_rating"], ref_tr, atol=1e-5)
    assert jnp.allclose(out["loss"], ref_loss, atol=1e-5)

    print("KERNEL_OK")
</pallas_src>

<mosaic_0001>
module attributes {stable_mosaic.version = 11 : i64} {
  func.func @_base_kernel(%arg0: i32, %arg1: memref<16x1xi32, #tpu.memory_space<vmem>>, %arg2: memref<2x16xf32, #tpu.memory_space<vmem>>, %arg3: memref<1x16xi32, #tpu.memory_space<vmem>>, %arg4: memref<1x16xf32, #tpu.memory_space<vmem>>, %arg5: memref<2x128xf32, #tpu.memory_space<vmem>>, %arg6: memref<2x128xf32, #tpu.memory_space<vmem>>, %arg7: memref<1x16xf32, #tpu.memory_space<vmem>>, %arg8: memref<1x1xf32, #tpu.memory_space<vmem>>, %arg9: memref<2x16xf32, #tpu.memory_space<vmem>>, %arg10: memref<1x1xf32, #tpu.memory_space<vmem>>, %arg11: memref<1x1xf32, #tpu.memory_space<vmem>>) attributes {dimension_semantics = [#tpu.dimension_semantics<arbitrary>], iteration_bounds = array<i64: 3>, scalar_prefetch = 0 : i64, scratch_operands = 3 : i64, tpu.core_type = #tpu.core_type<tc>, window_params = [{pipeline_mode = #tpu.pipeline_mode<synchronous>, transform_indices = @transform_0, window_bounds = array<i64: 16, 1>}, {pipeline_mode = #tpu.pipeline_mode<synchronous>, transform_indices = @transform_1, window_bounds = array<i64: 2, 16>}, {pipeline_mode = #tpu.pipeline_mode<synchronous>, transform_indices = @transform_2, window_bounds = array<i64: 1, 16>}, {pipeline_mode = #tpu.pipeline_mode<synchronous>, transform_indices = @transform_3, window_bounds = array<i64: 1, 16>}, {transform_indices = @transform_4, window_bounds = array<i64: 2, 128>}, {transform_indices = @transform_5, window_bounds = array<i64: 2, 128>}, {pipeline_mode = #tpu.pipeline_mode<synchronous>, transform_indices = @transform_6, window_bounds = array<i64: 1, 16>}, {pipeline_mode = #tpu.pipeline_mode<synchronous>, transform_indices = @transform_7, window_bounds = array<i64: 1, 1>}]} {
    %c0_i32 = arith.constant 0 : i32
    %0 = arith.cmpi eq, %arg0, %c0_i32 : i32
    %1 = arith.extui %0 : i1 to i32
    %c0_i32_0 = arith.constant 0 : i32
    %2 = arith.cmpi ne, %1, %c0_i32_0 : i32
    scf.if %2 {
      %cst_29 = arith.constant 0.000000e+00 : f32
      %59 = vector.broadcast %cst_29 : f32 to vector<2x16xf32>
      %c0_30 = arith.constant 0 : index
      %c0_31 = arith.constant 0 : index
      %60 = vector.load %arg9[%c0_30, %c0_31] : memref<2x16xf32, #tpu.memory_space<vmem>>, vector<2x16xf32>
      tpu.vector_store %arg9[%c0_30, %c0_31], %59 {strides = array<i32>} : memref<2x16xf32, #tpu.memory_space<vmem>>, vector<2x16xf32>,
      %cst_32 = arith.constant 0.000000e+00 : f32
      %61 = vector.broadcast %cst_32 : f32 to vector<1x1xf32>
      %c0_33 = arith.constant 0 : index
      %c0_34 = arith.constant 0 : index
      %62 = vector.load %arg10[%c0_33, %c0_34] : memref<1x1xf32, #tpu.memory_space<vmem>>, vector<1x1xf32>
      tpu.vector_store %arg10[%c0_33, %c0_34], %61 {strides = array<i32>} : memref<1x1xf32, #tpu.memory_space<vmem>>, vector<1x1xf32>,
      %cst_35 = arith.constant 0.000000e+00 : f32
      %63 = vector.broadcast %cst_35 : f32 to vector<1x1xf32>
      %c0_36 = arith.constant 0 : index
      %c0_37 = arith.constant 0 : index
      %64 = vector.load %arg11[%c0_36, %c0_37] : memref<1x1xf32, #tpu.memory_space<vmem>>, vector<1x1xf32>
      tpu.vector_store %arg11[%c0_36, %c0_37], %63 {strides = array<i32>} : memref<1x1xf32, #tpu.memory_space<vmem>>, vector<1x1xf32>,
    } else {
    }
    %c128_i32 = arith.constant 128 : i32
    %3 = arith.muli %arg0, %c128_i32 : i32
    %c0 = arith.constant 0 : index
    %c0_1 = arith.constant 0 : index
    %4 = vector.load %arg1[%c0, %c0_1] : memref<16x1xi32, #tpu.memory_space<vmem>>, vector<16x1xi32>
    %5 = vector.broadcast %3 : i32 to vector<16x1xi32>
    %6 = arith.subi %4, %5 : vector<16x1xi32>
    %7 = tpu.iota {dimensions = array<i32: 1>} : vector<16x128xi32>
    %8 = vector.broadcast %6 : vector<16x1xi32> to vector<16x128xi32>
    %9 = arith.cmpi eq, %7, %8 : vector<16x128xi32>
    %10 = arith.extui %9 : vector<16x128xi1> to vector<16x128xi32>
    %11 = arith.sitofp %10 : vector<16x128xi32> to vector<16x128xf32>
    %c0_2 = arith.constant 0 : index
    %c0_3 = arith.constant 0 : index
    %12 = vector.load %arg2[%c0_2, %c0_3] : memref<2x16xf32, #tpu.memory_space<vmem>>, vector<2x16xf32>
    %cst = arith.constant dense<0.000000e+00> : vector<2x128xf32>
    %13 = tpu.matmul %12, %11, %cst {dimension_numbers = #tpu.dot_dimension_numbers<[1], [0], [0], [1], [0, 0, 1, 1], [], []>} : vector<2x16xf32>, vector<16x128xf32>, vector<2x128xf32> -> vector<2x128xf32>
    %c0_4 = arith.constant 0 : index
    %c0_5 = arith.constant 0 : index
    %14 = vector.load %arg5[%c0_4, %c0_5] : memref<2x128xf32, #tpu.memory_space<vmem>>, vector<2x128xf32>
    %15 = arith.addf %14, %13 : vector<2x128xf32>
    %c0_6 = arith.constant 0 : index
    %c0_7 = arith.constant 0 : index
    %16 = vector.load %arg6[%c0_6, %c0_7] : memref<2x128xf32, #tpu.memory_space<vmem>>, vector<2x128xf32>
    tpu.vector_store %arg6[%c0_6, %c0_7], %15 {strides = array<i32>} : memref<2x128xf32, #tpu.memory_space<vmem>>, vector<2x128xf32>,
    %c0_8 = arith.constant 0 : index
    %c0_9 = arith.constant 0 : index
    %17 = vector.load %arg3[%c0_8, %c0_9] : memref<1x16xi32, #tpu.memory_space<vmem>>, vector<1x16xi32>
    %18 = vector.broadcast %3 : i32 to vector<1x16xi32>
    %19 = arith.subi %17, %18 : vector<1x16xi32>
    %20 = tpu.iota {dimensions = array<i32: 0>} : vector<128x16xi32>
    %21 = vector.broadcast %19 : vector<1x16xi32> to vector<128x16xi32>
    %22 = arith.cmpi eq, %20, %21 : vector<128x16xi32>
    %23 = arith.extui %22 : vector<128x16xi1> to vector<128x16xi32>
    %24 = arith.sitofp %23 : vector<128x16xi32> to vector<128x16xf32>
    %c0_10 = arith.constant 0 : index
    %c0_11 = arith.constant 0 : index
    %25 = vector.load %arg9[%c0_10, %c0_11] : memref<2x16xf32, #tpu.memory_space<vmem>>, vector<2x16xf32>
    %cst_12 = arith.constant dense<0.000000e+00> : vector<2x16xf32>
    %26 = tpu.matmul %15, %24, %cst_12 {dimension_numbers = #tpu.dot_dimension_numbers<[1], [0], [0], [1], [0, 0, 1, 1], [], []>} : vector<2x128xf32>, vector<128x16xf32>, vector<2x16xf32> -> vector<2x16xf32>
    %27 = arith.addf %25, %26 : vector<2x16xf32>
    %c0_13 = arith.constant 0 : index
    %c0_14 = arith.constant 0 : index
    %28 = vector.load %arg9[%c0_13, %c0_14] : memref<2x16xf32, #tpu.memory_space<vmem>>, vector<2x16xf32>
    tpu.vector_store %arg9[%c0_13, %c0_14], %27 {strides = array<i32>} : memref<2x16xf32, #tpu.memory_space<vmem>>, vector<2x16xf32>,
    %29 = vector.extract_strided_slice %15 {offsets = [0, 0], sizes = [1, 128], strides = [1, 1]} : vector<2x128xf32> to vector<1x128xf32>
    %30 = vector.extract_strided_slice %15 {offsets = [1, 0], sizes = [1, 128], strides = [1, 1]} : vector<2x128xf32> to vector<1x128xf32>
    %cst_15 = arith.constant 0.000000e+00 : f32
    %31 = vector.broadcast %cst_15 : f32 to vector<1x128xf32>
    %32 = arith.cmpf one, %30, %31 : vector<1x128xf32>
    %cst_16 = arith.constant 1.000000e+00 : f32
    %33 = vector.broadcast %cst_16 : f32 to vector<1x128xf32>
    %34 = arith.select %32, %30, %33 : vector<1x128xi1>, vector<1x128xf32>
    %35 = arith.divf %29, %34 : vector<1x128xf32>
    %cst_17 = arith.constant 0.000000e+00 : f32
    %36 = vector.broadcast %cst_17 : f32 to vector<1x128xf32>
    %37 = arith.select %32, %35, %36 : vector<1x128xi1>, vector<1x128xf32>
    %c0_18 = arith.constant 0 : index
    %c0_19 = arith.constant 0 : index
    %38 = vector.load %arg10[%c0_18, %c0_19] : memref<1x1xf32, #tpu.memory_space<vmem>>, vector<1x1xf32>
    %39 = vector.shape_cast %37 : vector<1x128xf32> to vector<1x1x128xf32>
    %cst_20 = arith.constant dense<0.000000e+00> : vector<1xf32>
    %40 = vector.multi_reduction <add>, %39, %cst_20 [1, 2] : vector<1x1x128xf32> to vector<1xf32>
    %41 = vector.shape_cast %40 : vector<1xf32> to vector<1x1x1xf32>
    %42 = vector.extract %41[0, 0, 0] : f32 from vector<1x1x1xf32>
    %43 = vector.broadcast %42 : f32 to vector<1x1xf32>
    %44 = arith.addf %38, %43 : vector<1x1xf32>
    %c0_21 = arith.constant 0 : index
    %c0_22 = arith.constant 0 : index
    %45 = vector.load %arg10[%c0_21, %c0_22] : memref<1x1xf32, #tpu.memory_space<vmem>>, vector<1x1xf32>
    tpu.vector_store %arg10[%c0_21, %c0_22], %44 {strides = array<i32>} : memref<1x1xf32, #tpu.memory_space<vmem>>, vector<1x1xf32>,
    %c0_23 = arith.constant 0 : index
    %c0_24 = arith.constant 0 : index
    %46 = vector.load %arg11[%c0_23, %c0_24] : memref<1x1xf32, #tpu.memory_space<vmem>>, vector<1x1xf32>
    %47 = arith.extui %32 : vector<1x128xi1> to vector<1x128xi32>
    %48 = arith.sitofp %47 : vector<1x128xi32> to vector<1x128xf32>
    %49 = vector.shape_cast %48 : vector<1x128xf32> to vector<1x1x128xf32>
    %cst_25 = arith.constant dense<0.000000e+00> : vector<1xf32>
    %50 = vector.multi_reduction <add>, %49, %cst_25 [1, 2] : vector<1x1x128xf32> to vector<1xf32>
    %51 = vector.shape_cast %50 : vector<1xf32> to vector<1x1x1xf32>
    %52 = vector.extract %51[0, 0, 0] : f32 from vector<1x1x1xf32>
    %53 = vector.broadcast %52 : f32 to vector<1x1xf32>
    %54 = arith.addf %46, %53 : vector<1x1xf32>
    %c0_26 = arith.constant 0 : index
    %c0_27 = arith.constant 0 : index
    %55 = vector.load %arg11[%c0_26, %c0_27] : memref<1x1xf32, #tpu.memory_space<vmem>>, vector<1x1xf32>
    tpu.vector_store %arg11[%c0_26, %c0_27], %54 {strides = array<i32>} : memref<1x1xf32, #tpu.memory_space<vmem>>, vector<1x1xf32>,
    %c2_i32 = arith.constant 2 : i32
    %56 = arith.cmpi eq, %arg0, %c2_i32 : i32
    %57 = arith.extui %56 : i1 to i32
    %c0_i32_28 = arith.constant 0 : i32
    %58 = arith.cmpi ne, %57, %c0_i32_28 : i32
    scf.if %58 {
      %c0_29 = arith.constant 0 : index
      %c0_30 = arith.constant 0 : index
      %59 = vector.load %arg9[%c0_29, %c0_30] : memref<2x16xf32, #tpu.memory_space<vmem>>, vector<1x16xf32>
      %c1 = arith.constant 1 : index
      %c0_31 = arith.constant 0 : index
      %60 = vector.load %arg9[%c1, %c0_31] : memref<2x16xf32, #tpu.memory_space<vmem>>, vector<1x16xf32>
      %cst_32 = arith.constant 1.000000e-10 : f32
      %61 = vector.broadcast %cst_32 : f32 to vector<1x16xf32>
      %62 = arith.addf %60, %61 : vector<1x16xf32>
      %63 = arith.divf %59, %62 : vector<1x16xf32>
      %c0_33 = arith.constant 0 : index
      %c0_34 = arith.constant 0 : index
      %64 = vector.load %arg10[%c0_33, %c0_34] : memref<1x1xf32, #tpu.memory_space<vmem>>, vector<1x1xf32>
      %c0_35 = arith.constant 0 : index
      %c0_36 = arith.constant 0 : index
      %65 = vector.load %arg11[%c0_35, %c0_36] : memref<1x1xf32, #tpu.memory_space<vmem>>, vector<1x1xf32>
      %cst_37 = arith.constant 1.000000e+00 : f32
      %66 = vector.broadcast %cst_37 : f32 to vector<1x1xf32>
      %67 = arith.maximumf %65, %66 : vector<1x1xf32>
      %68 = arith.divf %64, %67 : vector<1x1xf32>
      %cst_38 = arith.constant 0.000000e+00 : f32
      %69 = vector.broadcast %cst_38 : f32 to vector<1x16xf32>
      %70 = arith.cmpf oeq, %60, %69 : vector<1x16xf32>
      %71 = vector.shape_cast %68 : vector<1x1xf32> to vector<1x1xf32>
      %72 = vector.broadcast %71 : vector<1x1xf32> to vector<1x16xf32>
      %73 = arith.select %70, %72, %63 : vector<1x16xi1>, vector<1x16xf32>
      %c0_39 = arith.constant 0 : index
      %c0_40 = arith.constant 0 : index
      %74 = vector.load %arg7[%c0_39, %c0_40] : memref<1x16xf32, #tpu.memory_space<vmem>>, vector<1x16xf32>
      tpu.vector_store %arg7[%c0_39, %c0_40], %73 {strides = array<i32>} : memref<1x16xf32, #tpu.memory_space<vmem>>, vector<1x16xf32>,
      %c0_41 = arith.constant 0 : index
      %c0_42 = arith.constant 0 : index
      %75 = vector.load %arg4[%c0_41, %c0_42] : memref<1x16xf32, #tpu.memory_space<vmem>>, vector<1x16xf32>
      %76 = arith.subf %73, %75 : vector<1x16xf32>
      %77 = arith.mulf %76, %76 : vector<1x16xf32>
      %78 = vector.shape_cast %77 : vector<1x16xf32> to vector<1x1x16xf32>
      %cst_43 = arith.constant dense<0.000000e+00> : vector<1xf32>
      %79 = vector.multi_reduction <add>, %78, %cst_43 [1, 2] : vector<1x1x16xf32> to vector<1xf32>
      %80 = vector.shape_cast %79 : vector<1xf32> to vector<1x1x1xf32>
      %81 = vector.extract %80[0, 0, 0] : f32 from vector<1x1x1xf32>
      %82 = vector.broadcast %81 : f32 to vector<1x1xf32>
      %cst_44 = arith.constant 1.600000e+01 : f32
      %83 = vector.broadcast %cst_44 : f32 to vector<1x1xf32>
      %84 = arith.divf %82, %83 : vector<1x1xf32>
      %c0_45 = arith.constant 0 : index
      %c0_46 = arith.constant 0 : index
      %85 = vector.load %arg8[%c0_45, %c0_46] : memref<1x1xf32, #tpu.memory_space<vmem>>, vector<1x1xf32>
      tpu.vector_store %arg8[%c0_45, %c0_46], %84 {strides = array<i32>} : memref<1x1xf32, #tpu.memory_space<vmem>>, vector<1x1xf32>,
    } else {
    }
    return
  }
  func.func @transform_0(%arg0: i32) -> (i32, i32) {
    %c0_i32 = arith.constant 0 : i32
    %c0_i32_0 = arith.constant 0 : i32
    %c0_i32_1 = arith.constant 0 : i32
    return %c0_i32, %c0_i32_0 : i32, i32
  }
  func.func @transform_1(%arg0: i32) -> (i32, i32) {
    %c0_i32 = arith.constant 0 : i32
    %c0_i32_0 = arith.constant 0 : i32
    %c0_i32_1 = arith.constant 0 : i32
    return %c0_i32, %c0_i32_0 : i32, i32
  }
  func.func @transform_2(%arg0: i32) -> (i32, i32) {
    %c0_i32 = arith.constant 0 : i32
    %c0_i32_0 = arith.constant 0 : i32
    %c0_i32_1 = arith.constant 0 : i32
    return %c0_i32, %c0_i32_0 : i32, i32
  }
  func.func @transform_3(%arg0: i32) -> (i32, i32) {
    %c0_i32 = arith.constant 0 : i32
    %c0_i32_0 = arith.constant 0 : i32
    %c0_i32_1 = arith.constant 0 : i32
    return %c0_i32, %c0_i32_0 : i32, i32
  }
  func.func @transform_4(%arg0: i32) -> (i32, i32) {
    %c0_i32 = arith.constant 0 : i32
    %c0_i32_0 = arith.constant 0 : i32
    return %c0_i32, %arg0 : i32, i32
  }
  func.func @transform_5(%arg0: i32) -> (i32, i32) {
    %c0_i32 = arith.constant 0 : i32
    %c0_i32_0 = arith.constant 0 : i32
    return %c0_i32, %arg0 : i32, i32
  }
  func.func @transform_6(%arg0: i32) -> (i32, i32) {
    %c0_i32 = arith.constant 0 : i32
    %c0_i32_0 = arith.constant 0 : i32
    %c0_i32_1 = arith.constant 0 : i32
    return %c0_i32, %c0_i32_0 : i32, i32
  }
  func.func @transform_7(%arg0: i32) -> (i32, i32) {
    %c0_i32 = arith.constant 0 : i32
    %c0_i32_0 = arith.constant 0 : i32
    %c0_i32_1 = arith.constant 0 : i32
    return %c0_i32, %c0_i32_0 : i32, i32
  }
}

</mosaic_0001>

<bundles_post_ra>
// kernel: base_forward.1
= control target key start
LH: loop header
LB: loop body
LE: loop exit
PB: predicated region body
PF: predicated region fallthrough
CT: control target
= control target key end

     0   :  { %13 = vsyncpa [#allocation6], 0  ;;  %s946_s0 = inlined_call_operand.vmem [shape: s32[16,1], index: 0, kind: input, shape index: {}]   ;;  %s947_s1 = inlined_call_operand.vmem [shape: f32[2,16], index: 1, kind: input, shape index: {}]   ;;  %s948_s2 = inlined_call_operand.vmem [shape: s32[1,16], index: 2, kind: input, shape index: {}]   ;;  %s949_s3 = inlined_call_operand.vmem [shape: f32[1,16], index: 3, kind: input, shape index: {}]   ;;  %s950_s4 = inlined_call_operand.vmem [shape: f32[2,384], index: 4, kind: input, shape index: {}, may-alias: {4,5}]   ;;  %s951_s5 = inlined_call_operand.vmem [shape: f32[2,384], index: 5, kind: output, shape index: {0}, may-alias: {4,5}]   ;;  %s952_s6 = inlined_call_operand.hbm [shape: f32[1,16], index: 6, kind: output, shape index: {1}]   ;;  %s953_s7 = inlined_call_operand.hbm [shape: f32[1,1], index: 7, kind: output, shape index: {2}]  }
   0x1   :  { %14 = vsyncpa [#allocation8], 0  ;;  %s876_s24 = smov 0  }
   0x2 LB: > { %s882_s25 = sadd.s32 4294967295, %s826_s24   ;;  %p662_p0 = scmp.ge.s32.totalorder %s826_s24, 1  ;;  %s826_s24 = sphi %s876_s24, %s20_s24  }
   0x3   : > { %p233_p1 = scmp.lt.s32.totalorder %s826_s24, 4 }
   0x5   : > { %p234_p2 = pnand %p662_p0, %p233_p1 }
   0x6   : > { %p263_p3 = scmp.lt.s32.totalorder (!%p234_p2), %s882_s25, 2  ;;  %p665_p4 = scmp.ne.s32.totalorder (!%p234_p2), %s882_s25, 0 }
   0x7   : > { %237 = sbr.rel (%p234_p2) target bundleno = 841 (0x349), region = 40 }
   0xc   : > { %s264_s26 = scalar_select %p263_p3, %s882_s25, 2 }
   0xd   : > { %274 = sbr.rel (%p665_p4) target bundleno = 22 (0x16), region = 44 }
   0xe   : > { %s663_s27 = sshll.u32 %s264_s26, 1 }
   0xf   : > { %s891_s30 = scalar_lea.vmem %s950_s4, %s663_s27  ;;  %s896_s10 = scalar_lea.vmem %s951_s5, %s663_s27 }
  0x12   : > { %vm275_vm0 = vcmask 123904   ;;  %vm277_vm1 = vcmask 0   ;;  %v828_v0 = vmov 0.0  }
  0x13   : > { %276 = vst.msk [vmem:[#allocation2] sm:$0x3] %vm275_vm0, %v828_v0 }
  0x14   : > { %278 = vst.msk [vmem:[#allocation3] sm:$0x1] %vm277_vm1, %v828_v0 }
  0x15   : > { %279 = vst.msk [vmem:[#allocation4] sm:$0x1] %vm277_vm1, %v828_v0 }
  0x16 PF: > { %s666_s11 = sshll.u32 %s882_s25, 7  ;;  %v282_v1 = vld [vmem:[%s946_s0 + $0x8] sm:$0xff]  ;;  %v829_v2 = vmov 0   ;;  %v281_v5 = vld [vmem:[%s946_s0] sm:$0xff]  ;;  %v286_v9 = vlaneseq  ;;  %v830_v16 = vmov 1.0   ;;  %vm301_vm1 = vcmask 130048  }
  0x17   : > { %746 = vset.pattern.permute.xlu0 %v829_v2  ;;  %v283_v3 = vstv %s666_s11  ;;  %v328_v7 = vld [vmem:[%s948_s2] sm:$0x1]  ;;  %v831_v52 = vmov 0.0   ;;  %p705_p5 = scmp.ne.s32.totalorder %s882_s25, 2 }
  0x18   : > { %v285_v4 = vsub.s32 %v282_v1, %v283_v3  ;;  %v284_v6 = vsub.s32 %v281_v5, %v283_v3  ;;  %v329_v8 = vsub.s32 %v328_v7, %v283_v3  ;;  %v331_v10 = vshrl.u32 %v286_v9, 7  ;;  %v300_v30 = vld [vmem:[%s947_s1] sm:$0x3] }
  0x19   : > { %v287_v24 = vand.u32 127, %v286_v9  ;;  %v325_v32 = vld [vmem:[%s891_s30] sm:$0x3] }
  0x1a   : > { %292 = vperm.xlu0 %746, %v285_v4   ;;  %v347_v11 = vperm.slane %v329_v8, 0  ;;  %v346_v12 = vadd.s32 120, %v331_v10  ;;  %v345_v13 = vadd.s32 112, %v331_v10  ;;  %v344_v14 = vadd.s32 104, %v331_v10  ;;  %v396_v56 = vld [vmem:[#allocation2] sm:$0x3] }
  0x1b   : > { %v343_v15 = vadd.s32 96, %v331_v10  ;;  %v342_v17 = vadd.s32 88, %v331_v10  ;;  %v341_v18 = vadd.s32 80, %v331_v10  ;;  %v340_v19 = vadd.s32 72, %v331_v10  ;;  %v444_v9 = vld [vmem:[#allocation3] sm:$0x1] }
  0x1c   : > { %vm363_vm2 = vcmp.eq.s32.totalorder %v346_v12, %v347_v11  ;;  %vm362_vm3 = vcmp.eq.s32.totalorder %v345_v13, %v347_v11  ;;  %vm361_vm4 = vcmp.eq.s32.totalorder %v344_v14, %v347_v11  ;;  %v339_v20 = vadd.s32 64, %v331_v10  ;;  %v463_v12 = vld [vmem:[#allocation4] sm:$0x1] }
  0x1d   : > { %688 = vmatpush.msk.msra.mxu1 %vm363_vm2, %v830_v16  ;;  %vm360_vm5 = vcmp.eq.s32.totalorder %v343_v15, %v347_v11  ;;  %vm359_vm6 = vcmp.eq.s32.totalorder %v342_v17, %v347_v11  ;;  %vm358_vm7 = vcmp.eq.s32.totalorder %v341_v18, %v347_v11  ;;  %vm357_vm8 = vcmp.eq.s32.totalorder %v340_v19, %v347_v11 }
  0x1e   : > { %v338_v21 = vadd.s32 56, %v331_v10  ;;  %vm356_vm9 = vcmp.eq.s32.totalorder %v339_v20, %v347_v11  ;;  %v337_v22 = vadd.s32 48, %v331_v10  ;;  %v336_v23 = vadd.s32 40, %v331_v10 }
  0x1f   : > { %689 = vmatpush.msk.msra.mxu1 %vm362_vm3, %v830_v16  ;;  %v335_v25 = vadd.s32 32, %v331_v10  ;;  %v334_v26 = vadd.s32 24, %v331_v10  ;;  %v333_v28 = vadd.s32 16, %v331_v10  ;;  %v332_v31 = vadd.s32 8, %v331_v10 }
  0x20   : > { %vm355_vm10 = vcmp.eq.s32.totalorder %v338_v21, %v347_v11  ;;  %vm354_vm11 = vcmp.eq.s32.totalorder %v337_v22, %v347_v11  ;;  %vm353_vm12 = vcmp.eq.s32.totalorder %v336_v23, %v347_v11 }
  0x21   : > { %690 = vmatpush.msk.msra.mxu1 %vm361_vm4, %v830_v16  ;;  %vm352_vm14 = vcmp.eq.s32.totalorder %v335_v25, %v347_v11  ;;  %vm351_vm15 = vcmp.eq.s32.totalorder %v334_v26, %v347_v11  ;;  %vm350_vm0 = vcmp.eq.s32.totalorder %v333_v28, %v347_v11  ;;  %vm349_vm3 = vcmp.eq.s32.totalorder %v332_v31, %v347_v11 }
  0x22   : > { %289 = vperm.xlu0 %746, %v284_v6   ;;  %vm348_vm4 = vcmp.eq.s32.totalorder %v331_v10, %v347_v11 }
  0x23   : > { %691 = vmatpush.msk.msra.mxu1 %vm360_vm5, %v830_v16 }
  0x25   : > { %692 = vmatpush.msk.msra.mxu1 %vm359_vm6, %v830_v16 }
  0x27   : > { %693 = vmatpush.msk.msra.mxu1 %vm358_vm7, %v830_v16 }
  0x29   : > { %694 = vmatpush.msk.msra.mxu1 %vm357_vm8, %v830_v16 }
  0x2b   : > { %695 = vmatpush.msk.msra.mxu1 %vm356_vm9, %v830_v16 }
  0x2d   : > { %696 = vmatpush.msk.msra.mxu1 %vm355_vm10, %v830_v16  ;;  %vm448_vm10 = vcmask 1040384  }
  0x2f   : > { %697 = vmatpush.msk.msra.mxu1 %vm354_vm11, %v830_v16  ;;  %vm418_vm11 = vcmask 123904  }
  0x31   : > { %698 = vmatpush.msk.msra.mxu1 %vm353_vm12, %v830_v16  ;;  %vm461_vm12 = vcmask 0  }
  0x33   : > { %699 = vmatpush.msk.msra.mxu1 %vm352_vm14, %v830_v16 }
  0x35   : > { %700 = vmatpush.msk.msra.mxu1 %vm351_vm15, %v830_v16 }
  0x37   : > { %701 = vmatpush.msk.msra.mxu1 %vm350_vm0, %v830_v16 }
  0x39   : > { %702 = vmatpush.msk.msra.mxu1 %vm349_vm3, %v830_v16 }
  0x3b   : > { %703 = vmatpush.msk.msra.mxu1 %vm348_vm4, %v830_v16 }
  0x8c   : > { %v293_v27 = vpop.permute.xlu0 %292 }
  0x8d   : > { %vm295_vm13 = vcmp.eq.s32.totalorder %v287_v24, %v293_v27 }
  0x8e   : > { %669 = vmatpush.msk.msra.mxu0 %vm295_vm13, %v830_v16 }
  0x94   : > { %v290_v29 = vpop.permute.xlu0 %289 }
  0x95   : > { %vm294_vm2 = vcmp.eq.s32.totalorder %v287_v24, %v290_v29 }
  0x96   : > { %670 = vmatpush.msk.msra.mxu0 %vm294_vm2, %v830_v16 }
  0x97   : > { %671 = vmatmul.msk.f32.vlgmr.msra.gmra.mxu0 %vm301_vm1, %v300_v30 }
 0x114   : > { %v322_v33 = vpop.f32.mrf.mxu0 }
 0x115   : > { %v326_v34 = vadd.f32 %v325_v32, %v322_v33 }
 0x117   : > { %327 = vst [vmem:[%s896_s10] sm:$0x3] %v326_v34  ;;  %413 = vmatmul.f32.vlgmr.msra.gmra.mxu1 %v326_v34  ;;  %vm420_vm5 = vcmp.ne.f32.partialorder %v326_v34, 0.0 }
 0x118   : > { %v421_v35 = vsel %vm420_vm5, %v326_v34, 1.0  ;;  %v704_v53 = vsel %vm420_vm5, 1.0, %v831_v52 }
 0x119   : > { %v423_v36 = vrot.slane %v421_v35, 1  ;;  %v467_v54 = vrot.slane %v704_v53, 1 }
 0x11b   : > { %747 = vrcp.f32 %v423_v36  ;;  %v436_v40 = vand.u32 2147483648, %v423_v36  ;;  %v434_v42 = vand.u32 2147483647, %v423_v36  ;;  %vm430_vm7 = vweird.f32 %v423_v36 }
 0x11c   : > { %v469_v55 = vsel %vm448_vm10, %v467_v54, 0.0 }
 0x11d   : > { %v437_v44 = vor.u32 1.1754944e-38, %v436_v40  ;;  %vm435_vm9 = vcmp.eq.f32.partialorder %v434_v42, 8.507059e+37 }
 0x121   : > { %v748_v37 = vpop.eup %747 }
 0x122   : > { %v426_v38 = vmul.f32 %v748_v37, %v423_v36  ;;  %vm431_vm6 = vweird.f32 %v748_v37 }
 0x123   : > { %vm432_vm8 = vmor %vm430_vm7, %vm431_vm6 }
 0x124   : > { %v427_v39 = vsub.f32 1.0, %v426_v38 }
 0x126   : > { %v428_v41 = vmul.f32 %v748_v37, %v427_v39 }
 0x128   : > { %v429_v43 = vadd.f32 %v748_v37, %v428_v41 }
 0x12a   : > { %v433_v45 = vsel %vm432_vm8, %v748_v37, %v429_v43 }
 0x12b   : > { %v438_v46 = vsel %vm435_vm9, %v437_v44, %v433_v45 }
 0x12c   : > { %v439_v47 = vmul.f32 %v438_v46, %v326_v34 }
 0x12e   : > { %v441_v48 = vrot.slane %v439_v47, 7 }
 0x130   : > { %v443_v49 = vsel %vm420_vm5, %v441_v48, 0.0 }
 0x131   : > { %v446_v50 = vrot.slane %v443_v49, 1 }
 0x133   : > { %v449_v51 = vsel %vm448_vm10, %v446_v50, 0.0 }
 0x134   : > { %450 = vadd.xlane.f32.xlu1 %v449_v51 }
 0x13c   : > { %470 = vadd.xlane.f32.xlu1 %v469_v55 }
 0x194   : > { %v414_v57 = vpop.f32.mrf.mxu1 }
 0x195   : > { %v417_v58 = vadd.f32 %v414_v57, %v396_v56 }
 0x197   : > { %419 = vst.msk [vmem:[#allocation2] sm:$0x3] %vm418_vm11, %v417_v58 }
 0x1a7   : > { %v451_v59 = vpop.xlane.xlu1 %450 }
 0x1a8   : > { %v452_v60 = vrot.slane %v451_v59, 4 }
 0x1aa   : > { %v453_v61 = vadd.f32 %v452_v60, %v451_v59 }
 0x1ac   : > { %v454_v62 = vrot.slane %v453_v61, 2 }
 0x1ae   : > { %v455_v63 = vadd.f32 %v454_v62, %v453_v61 }
 0x1af   : > { %v471_v0 = vpop.xlane.xlu1 %470 }
 0x1b0   : > { %v472_v1 = vrot.slane %v471_v0, 4  ;;  %v456_v2 = vrot.slane %v455_v63, 1 }
 0x1b2   : > { %v473_v3 = vadd.f32 %v472_v1, %v471_v0  ;;  %v457_v4 = vadd.f32 %v456_v2, %v455_v63 }
 0x1b4   : > { %v474_v5 = vrot.slane %v473_v3, 2  ;;  %712 = vpush %v457_v4 }
 0x1b6   : > { %v475_v6 = vadd.f32 %v474_v5, %v473_v3 }
 0x1b8   : > { %v476_v7 = vrot.slane %v475_v6, 1 }
 0x1ba   : > { %v477_v8 = vadd.f32 %v476_v7, %v475_v6 }
 0x1bc   : > { %714 = vpush %v477_v8 }
 0x1e5   : > { %s713_s20 = spop %712 }
 0x1e6   : > { %v459_v10 = vstv %s713_s20 }
 0x1e7   : > { %v460_v11 = vadd.f32 %v459_v10, %v444_v9 }
 0x1e9   : > { %462 = vst.msk [vmem:[#allocation3] sm:$0x1] %vm461_vm12, %v460_v11 }
 0x1ed   : > { %s715_s21 = spop %714  ;;  %485 = sbr.rel (%p705_p5) target bundleno = 831 (0x33f), region = 48 }
 0x1ee   : > { %v479_v13 = vstv %s715_s21 }
 0x1ef   : > { %v480_v14 = vadd.f32 %v479_v13, %v463_v12 }
 0x1f1   : > { %481 = vst.msk [vmem:[#allocation4] sm:$0x1] %vm461_vm12, %v480_v14 }
 0x1f2   : > { %v832_v16 = vmov 0   ;;  %v504_v26 = vld [vmem:[#allocation3] sm:$0x1]  ;;  %v487_v30 = vld [vmem:[#allocation2 + $0x1] sm:$0x1]  ;;  %vm530_vm6 = vcmask 122880  }
 0x1f3   : > { %749 = vset.pattern.permute.xlu0 %v832_v16  ;;  %v488_v31 = vadd.f32 1e-10, %v487_v30  ;;  %v486_v41 = vld [vmem:[#allocation2] sm:$0x1]  ;;  %vm522_vm5 = vcmp.eq.f32.partialorder %v487_v30, 0.0  ;;  %v833_v58 = vmov 16.0  }
 0x1f4   : > { %v532_v46 = vld [vmem:[%s949_s3] sm:$0x1] }
 0x1f5   : > { %vm494_vm1 = vweird.f32 %v488_v31  ;;  %v500_v36 = vand.u32 2147483648, %v488_v31  ;;  %v498_v38 = vand.u32 2147483647, %v488_v31 }
 0x1f7   : > { %v501_v39 = vor.u32 1.1754944e-38, %v500_v36  ;;  %vm499_vm4 = vcmp.eq.f32.partialorder %v498_v38, 8.507059e+37 }
 0x1f8   : > { %v505_v15 = vld [vmem:[#allocation4] sm:$0x1] }
 0x1f9   : > { %v506_v17 = vmax.f32 %v505_v15, 1.0 }
 0x1fb   : > { %750 = vrcp.f32 %v506_v17  ;;  %v518_v20 = vand.u32 2147483648, %v506_v17  ;;  %vm512_vm13 = vweird.f32 %v506_v17  ;;  %v516_v22 = vand.u32 2147483647, %v506_v17 }
 0x1fc   : > { %752 = vrcp.f32 %v488_v31 }
 0x1fd   : > { %v519_v24 = vor.u32 1.1754944e-38, %v518_v20  ;;  %vm517_vm0 = vcmp.eq.f32.partialorder %v516_v22, 8.507059e+37  ;;  %754 = vrcp.f32 %v833_v58 }
 0x201   : > { %v751_v18 = vpop.eup %750 }
 0x202   : > { %v508_v19 = vmul.f32 %v751_v18, %v506_v17  ;;  %vm513_vm14 = vweird.f32 %v751_v18  ;;  %v753_v32 = vpop.eup %752 }
 0x203   : > { %vm514_vm15 = vmor %vm512_vm13, %vm513_vm14  ;;  %v490_v33 = vmul.f32 %v753_v32, %v488_v31  ;;  %vm495_vm2 = vweird.f32 %v753_v32  ;;  %v755_v59 = vpop.eup %754 }
 0x204   : > { %v509_v21 = vsub.f32 1.0, %v508_v19  ;;  %vm496_vm3 = vmor %vm494_vm1, %vm495_vm2  ;;  %v547_v60 = vmul.f32 16.0, %v755_v59  ;;  %vm551_vm7 = vweird.f32 %v755_v59 }
 0x205   : > { %v491_v34 = vsub.f32 1.0, %v490_v33 }
 0x206   : > { %v510_v23 = vmul.f32 %v751_v18, %v509_v21  ;;  %v548_v61 = vsub.f32 1.0, %v547_v60 }
 0x207   : > { %v492_v35 = vmul.f32 %v753_v32, %v491_v34 }
 0x208   : > { %v511_v25 = vadd.f32 %v751_v18, %v510_v23  ;;  %v549_v62 = vmul.f32 %v755_v59, %v548_v61 }
 0x209   : > { %v493_v37 = vadd.f32 %v753_v32, %v492_v35 }
 0x20a   : > { %v515_v27 = vsel %vm514_vm15, %v751_v18, %v511_v25  ;;  %v550_v63 = vadd.f32 %v755_v59, %v549_v62 }
 0x20b   : > { %v520_v28 = vsel %vm517_vm0, %v519_v24, %v515_v27  ;;  %v497_v40 = vsel %vm496_vm3, %v753_v32, %v493_v37 }
 0x20c   : > { %v521_v29 = vmul.f32 %v520_v28, %v504_v26  ;;  %v502_v42 = vsel %vm499_vm4, %v501_v39, %v497_v40  ;;  %v552_v0 = vsel %vm551_vm7, %v755_v59, %v550_v63 }
 0x20d   : > { %v503_v43 = vmul.f32 %v502_v42, %v486_v41 }
 0x20e   : > { %525 = vperm.xlu0 %749, %v521_v29  }
 0x280   : > { %v526_v44 = vpop.permute.xlu0 %525 }
 0x281   : > { %v528_v45 = vperm.slane %v526_v44, 0 }
 0x283   : > { %v529_v47 = vsel %vm522_vm5, %v528_v45, %v503_v43 }
 0x284   : > { %v533_v48 = vsub.f32 %v529_v47, %v532_v46  ;;  %531 = vst.msk [vmem:[#allocation5] sm:$0x1] %vm530_vm6, %v529_v47 }
 0x286   : > { %v534_v49 = vmul.f32 %v533_v48, %v533_v48 }
 0x288   : > { %v535_v50 = vsel %vm530_vm6, %v534_v49, 0.0 }
 0x289   : > { %536 = vadd.xlane.f32.xlu0 %v535_v50 }
 0x2fc   : > { %v537_v51 = vpop.xlane.xlu0 %536 }
 0x2fd   : > { %v538_v52 = vrot.slane %v537_v51, 4 }
 0x2ff   : > { %v539_v53 = vadd.f32 %v538_v52, %v537_v51 }
 0x301   : > { %v540_v54 = vrot.slane %v539_v53, 2 }
 0x303   : > { %v541_v55 = vadd.f32 %v540_v54, %v539_v53 }
 0x305   : > { %v542_v56 = vrot.slane %v541_v55, 1 }
 0x307   : > { %v543_v57 = vadd.f32 %v542_v56, %v541_v55 }
 0x309   : > { %716 = vpush %v543_v57 }
 0x33a   : > { %s717_s26 = spop %716 }
 0x33b   : > { %v545_v1 = vstv %s717_s26 }
 0x33c   : > { %v553_v2 = vmul.f32 %v552_v0, %v545_v1 }
 0x33e   : > { %554 = vst.msk [vmem:[#allocation7] sm:$0x1] %vm461_vm12, %v553_v2 }
 0x33f PF: > { %p726_p6 = scmp.eq.s32.totalorder %s882_s25, 2  ;;  %s834_s27 = smov [#allocation5]  }
 0x340   : > { %s568_s28 = sshll.u32 %s834_s27, 4  ;;  %s570_s8 = sshll.u32 %s952_s6, 4  ;;  %s569_s28 = int_to_ptr.vmem [resolvable:$true] %s568_s28  ;;  %s571_s8 = int_to_ptr.hbm [resolvable:$true] %s570_s8 }
 0x341   : > { %719 = dma.vmem_to_hbm [thread:$0]  (%p726_p6), %s569_s28, 16, %s571_s8, [#allocation6]  }
 0x342   : > { %s582_s11 = sshll.u32 %s953_s7, 4  ;;  %s835_s12 = smov [#allocation7]   ;;  %s583_s11 = int_to_ptr.hbm [resolvable:$true] %s582_s11 }
 0x343   : > { %s580_s13 = sshll.u32 %s835_s12, 4  ;;  %s581_s13 = int_to_ptr.vmem [resolvable:$true] %s580_s13 }
 0x344   : > { %721 = dma.vmem_to_hbm [thread:$0]  (%p726_p6), %s581_s13, 16, %s583_s11, [#allocation8]  }
 0x345   : > { %817 = dma.done.wait (%p726_p6), [#allocation6], 16  }
 0x346   : > { %819 = vsyncadd (%p726_p6), [#allocation6], 4294967280 }
 0x347   : > { %821 = dma.done.wait (%p726_p6), [#allocation8], 16  }
 0x348   : > { %823 = vsyncadd (%p726_p6), [#allocation8], 4294967280 }
 0x349 PF: > { %s20_s24 = sadd.s32 1, %s826_s24  }
 0x34a   : > { %p17_p7 = scmp.ge.s32.totalorder %s20_s24, 5  }
 0x34c   :  { %19 = sbr.rel (!%p17_p7) target bundleno = 2 (0x2), region = 95 }
 0x351   :  { %608 = vsyncpa [#allocation6], 1 }
 0x352   :  { %610 = vsyncpa [#allocation6 + $0x1], 1 }
 0x353   :  { %611 = vsyncpa [#allocation8], 1 }

</bundles_post_ra>
